<compile_context>
chip_gen: v5e
topology: v5e:2x2
jax: 0.10.0
libtpu: 0.0.40
codegen_flags: <defaults>
</compile_context>

<pallas_src>
import functools
import numpy as np
import jax
import jax.numpy as jnp
from jax import lax
from jax.experimental import pallas as pl
from jax.experimental.pallas import tpu as pltpu


LANE = 128                        # TPU lane width: pad head dims to this multiple
_VMEM_BUDGET = 48 * 1024 * 1024   # conservative for v7x (64 MiB/TC), raises v5e/v6e default


# ------------------------------------------------------------------ glue ----

def _round_up(x, m):
    return ((x + m - 1) // m) * m


def _xpos_sin_cos(seq_len, head_dim, scale_base=512, downscale=False, offset=0):
    """Replicates XPOS.forward's (sin*scale, cos*scale) duplicate-interleaved tables."""
    half = head_dim // 2
    scale_vec = (np.arange(0, head_dim, 2, dtype=np.float64) + 0.4 * head_dim) / (1.4 * head_dim)
    min_pos = -(seq_len + offset) // 2                      # python floor-div, matches torch
    max_pos = seq_len + offset + min_pos
    power = np.arange(min_pos, max_pos, dtype=np.float64) / scale_base
    scale = scale_vec[None, :] ** power[:, None]            # (S, half)

    # fixed_pos_embedding(scale): only the *shape* of scale matters
    inv_freq = 1.0 / (10000.0 ** (np.arange(0, half, dtype=np.float64) / half))
    sinusoid = np.arange(seq_len, dtype=np.float64)[:, None] * inv_freq[None, :]
    sin, cos = np.sin(sinusoid), np.cos(sinusoid)

    if scale.shape[0] > seq_len:                            # (never hits for offset=0)
        scale, sin, cos = scale[-seq_len:], sin[-seq_len:], cos[-seq_len:]
    if downscale:
        scale = 1.0 / scale

    # duplicate_interleave == repeat each column twice, interleaved
    sin_s = np.repeat(sin * scale, 2, axis=1).astype(np.float32)   # (S, head_dim)
    cos_s = np.repeat(cos * scale, 2, axis=1).astype(np.float32)
    return jnp.asarray(sin_s), jnp.asarray(cos_s)


def _rotate_every_two_matrix(head_dim):
    """Permutation/sign matrix R s.t. x @ R == rotate_every_two(x)."""
    R = np.zeros((head_dim, head_dim), dtype=np.float32)
    for i in range(head_dim // 2):
        R[2 * i + 1, 2 * i] = -1.0   # out[2i]   = -x[2i+1]
        R[2 * i, 2 * i + 1] = 1.0    # out[2i+1] =  x[2i]
    return jnp.asarray(R)


def _pick_tile(S, pref=512):
    """Largest bf16-friendly tile (sublane multiple of 16) dividing S; else full S."""
    for t in (pref, 256, 128, 64, 32, 16):
        if t <= S and S % t == 0:
            return t
    return S


def _proj_tile(S, H, wtot, hdp, vdp):
    """VMEM-aware row tile for the projection kernel."""
    tm = _pick_tile(S)

    def est(t):
        x_tile = t * H * 2                      # bf16 X tile
        w = H * wtot * 2                        # fused bf16 weights
        tables = 4 * t * hdp * 4                # f32 sin/cos tiles
        outs = t * (2 * hdp + vdp) * 2          # bf16 Q/K/V out tiles
        return 2 * (x_tile + tables + outs + w) # double-buffered estimate

    while tm % 2 == 0 and tm >= 32 and S % (tm // 2) == 0 and est(tm) > _VMEM_BUDGET // 2:
        tm //= 2
    return tm


# --------------------------------------------------------------- kernels ----

def _proj_xpos_kernel(x_ref, w_ref, cq_ref, sq_ref, ck_ref, sk_ref,
                      q_ref, k_ref, v_ref, *, hdp, vdp):
    """Fused [Q | rot(Q) | K | rot(K) | V] projection + xpos for one (tm, H) row tile."""
    # One MXU matmul (single RHS push, single pass over X) instead of five.
    y = jnp.dot(x_ref[...], w_ref[...], preferred_element_type=jnp.float32)
    q, qr = y[:, 0 * hdp:1 * hdp], y[:, 1 * hdp:2 * hdp]
    k, kr = y[:, 2 * hdp:3 * hdp], y[:, 3 * hdp:4 * hdp]
    v = y[:, 4 * hdp:4 * hdp + vdp]

    # xpos: t*cos + rotate_every_two(t)*sin  (rotation folded into the weights)
    q_ref[...] = (q * cq_ref[...] + qr * sq_ref[...]).astype(q_ref.dtype)
    k_ref[...] = (k * ck_ref[...] + kr * sk_ref[...]).astype(k_ref.dtype)
    v_ref[...] = v.astype(v_ref.dtype)


def _make_retention_kernel(log_gamma, tq, tk):
    """Flash-style retention: accumulate (Q K^T * D) V over kv tiles."""

    def kernel(q_ref, k_ref, v_ref, o_ref, acc_ref):
        i = pl.program_id(1)          # q-tile index
        j = pl.program_id(2)          # kv-tile index (innermost, "arbitrary")
        q_start = i * tq
        k_start = j * tk

        @pl.when(j == 0)
        def _():
            acc_ref[...] = jnp.zeros_like(acc_ref)

        def qk():
            # (tq, tk) scores: contract last dims of Q and K -> no K transpose.
            return lax.dot_general(
                q_ref[...], k_ref[...],
                dimension_numbers=(((1,), (1,)), ((), ())),
                preferred_element_type=jnp.float32)

        def accumulate(p):
            acc_ref[...] += lax.dot_general(
                p, v_ref[...],
                dimension_numbers=(((1,), (0,)), ((), ())),
                preferred_element_type=jnp.float32)

        is_past = q_start >= k_start + tk      # every n >= every m: no causal mask needed
        is_future = k_start >= q_start + tq    # decay mask identically zero: skip compute

        @pl.when(is_past)
        def _():
            # D[n, m] = gamma^(n-m) = gamma^(n-base) * gamma^(base-m), base = last key
            # of this kv tile -> both exponents >= 0, no overflow, O(tq+tk) exp only.
            s = qk()
            base = k_start + tk - 1
            row_e = lax.broadcasted_iota(jnp.float32, (tq, 1), 0) \
                    + (q_start - base).astype(jnp.float32)
            col_e = float(tk - 1) - lax.broadcasted_iota(jnp.float32, (1, tk), 1)
            row = jnp.exp(row_e * log_gamma)                       # (tq, 1)
            col = jnp.exp(col_e * log_gamma)                       # (1, tk)
            accumulate(((s * row) * col).astype(jnp.bfloat16))     # 2 VPU mults / element

        @pl.when(jnp.logical_and(jnp.logical_not(is_past), jnp.logical_not(is_future)))
        def _():
            # Diagonal / overlapping tile: element-wise decay + causal mask.
            s = qk()
            n = lax.broadcasted_iota(jnp.int32, (tq, tk), 0) + q_start
            m = lax.broadcasted_iota(jnp.int32, (tq, tk), 1) + k_start
            delta = n - m
            dpos = jnp.maximum(delta, 0).astype(jnp.float32)       # avoid inf in masked lanes
            d = jnp.where(delta >= 0, jnp.exp(dpos * log_gamma), 0.0)
            accumulate((s * d).astype(jnp.bfloat16))

        @pl.when(j == pl.num_programs(2) - 1)
        def _():
            o_ref[...] = acc_ref[...].astype(o_ref.dtype)

    return kernel


# --------------------------------------------------------------- wrapper ----

def simple_retention(x, wq, wk, wv, gamma, scale_base=512, out_dtype=jnp.float32):
    B, S, H = x.shape
    hd = wq.shape[1]
    vd = wv.shape[1]
    assert hd % 2 == 0, "rotate_every_two requires an even head dim"
    bf16 = jnp.bfloat16

    hdp = _round_up(hd, LANE)     # lane-dense head dim (zero-padded -> exact math)
    vdp = _round_up(vd, LANE)     # lane-dense value dim

    # Position-dependent constant tables (depend only on S, hd); zero-pad to hdp.
    sin_q, cos_q = _xpos_sin_cos(S, hd, scale_base, downscale=False)
    sin_k, cos_k = _xpos_sin_cos(S, hd, scale_base, downscale=True)
    pad_tab = lambda t: jnp.pad(t, ((0, 0), (0, hdp - hd)))
    sin_q, cos_q, sin_k, cos_k = map(pad_tab, (sin_q, cos_q, sin_k, cos_k))

    # Fold rotate-every-two into the weights (rot(X@W) == X@(W@R)), zero-pad each
    # segment to a lane multiple, and fuse all five projections into one RHS.
    R = _rotate_every_two_matrix(hd)
    wq32, wk32, wv32 = (w.astype(jnp.float32) for w in (wq, wk, wv))
    pad_w = lambda w, p: jnp.pad(w, ((0, 0), (0, p - w.shape[1])))
    w_all = jnp.concatenate([
        pad_w(wq32, hdp), pad_w(wq32 @ R, hdp),
        pad_w(wk32, hdp), pad_w(wk32 @ R, hdp),
        pad_w(wv32, vdp)], axis=1).astype(bf16)              # (H, 4*hdp + vdp)
    wtot = 4 * hdp + vdp

    x_b = x.astype(bf16)          # cast at the boundary: halves X HBM read + VMEM tile

    # ---------------- kernel 1: fused projections + xpos (hoisted) ----------
    tm = _proj_tile(S, H, wtot, hdp, vdp)
    row3 = lambda b, i: (b, i, 0)
    seq2 = lambda b, i: (i, 0)
    full2 = lambda b, i: (0, 0)

    q, k, v = pl.pallas_call(
        functools.partial(_proj_xpos_kernel, hdp=hdp, vdp=vdp),
        grid=(B, S // tm),
        in_specs=[
            pl.BlockSpec((None, tm, H), row3),      # X (bf16, batch dim squeezed)
            pl.BlockSpec((H, wtot), full2),         # fused weights (constant block index)
            pl.BlockSpec((tm, hdp), seq2),          # cos (Q)
            pl.BlockSpec((tm, hdp), seq2),          # sin (Q)
            pl.BlockSpec((tm, hdp), seq2),          # cos (K, downscaled)
            pl.BlockSpec((tm, hdp), seq2),          # sin (K, downscaled)
        ],
        out_specs=[
            pl.BlockSpec((None, tm, hdp), row3),
            pl.BlockSpec((None, tm, hdp), row3),
            pl.BlockSpec((None, tm, vdp), row3),
        ],
        out_shape=(
            jax.ShapeDtypeStruct((B, S, hdp), bf16),   # Q (xpos applied)
            jax.ShapeDtypeStruct((B, S, hdp), bf16),   # K (xpos applied, downscaled)
            jax.ShapeDtypeStruct((B, S, vdp), bf16),   # V
        ),
        compiler_params=pltpu.CompilerParams(
            dimension_semantics=("parallel", "parallel"),
            vmem_limit_bytes=_VMEM_BUDGET),
    )(x_b, w_all, cos_q, sin_q, cos_k, sin_k)

    # ---------------- kernel 2: flash-style tiled retention -----------------
    tq = _pick_tile(S)
    tk = _pick_tile(S)
    jmax = lambda i: ((i + 1) * tq - 1) // tk   # last kv block with any non-zero decay

    kernel = _make_retention_kernel(float(np.log(gamma)), tq, tk)
    out = pl.pallas_call(
        kernel,
        grid=(B, S // tq, S // tk),                        # kv axis last ("arbitrary")
        in_specs=[
            pl.BlockSpec((None, tq, hdp), lambda b, i, j: (b, i, 0)),
            # Clamp the kv block index so fully-masked (future) tiles re-use the
            # previous block index -> Pallas skips their K/V DMAs entirely.
            pl.BlockSpec((None, tk, hdp),
                         lambda b, i, j: (b, jnp.minimum(j, jmax(i)), 0)),
            pl.BlockSpec((None, tk, vdp),
                         lambda b, i, j: (b, jnp.minimum(j, jmax(i)), 0)),
        ],
        out_specs=pl.BlockSpec((None, tq, vdp), lambda b, i, j: (b, i, 0)),
        out_shape=jax.ShapeDtypeStruct((B, S, vdp), out_dtype),
        scratch_shapes=[pltpu.VMEM((tq, vdp), jnp.float32)],           # accumulator
        compiler_params=pltpu.CompilerParams(
            dimension_semantics=("parallel", "parallel", "arbitrary"),
            vmem_limit_bytes=_VMEM_BUDGET),
    )(q, k, v)

    return out[..., :vd]          # drop the zero lane padding


# ----------------------------------------------------------- pure-JAX ref ---

def _retention_reference(x, wq, wk, wv, gamma, scale_base=512):
    S, hd = x.shape[1], wq.shape[1]
    sin_q, cos_q = _xpos_sin_cos(S, hd, scale_base, downscale=False)
    sin_k, cos_k = _xpos_sin_cos(S, hd, scale_base, downscale=True)

    n = np.arange(S)[:, None].astype(np.float64)
    m = np.arange(S)[None, :].astype(np.float64)
    D = np.nan_to_num((gamma ** (n - m)) * (n >= m), nan=0.0)
    D = jnp.asarray(D, dtype=jnp.float32)

    def rot(t):
        t1 = t[..., ::2]
        t2 = t[..., 1::2]
        return jnp.stack([-t2, t1], axis=-1).reshape(t.shape)

    q = x @ wq
    k = x @ wk
    v = x @ wv
    q = q * cos_q + rot(q) * sin_q
    k = k * cos_k + rot(k) * sin_k
    ret = jnp.einsum('bsd,btd->bst', q, k) * D[None]
    return jnp.einsum('bst,btv->bsv', ret, v)


# ------------------------------------------------------------------ main ----

if __name__ == "__main__":
    batch, seq, hidden = 2, 8, 32
    head_size = hidden            # head_size defaults to hidden_size
    double_v_dim = False
    v_dim = head_size * 2 if double_v_dim else head_size
    gamma = 0.9

    key = jax.random.PRNGKey(0)
    kx, kq, kk, kv_ = jax.random.split(key, 4)
    X = jax.random.normal(kx, (batch, seq, hidden), dtype=jnp.float32)
    W_Q = jax.random.normal(kq, (hidden, head_size), dtype=jnp.float32) / hidden
    W_K = jax.random.normal(kk, (hidden, head_size), dtype=jnp.float32) / hidden
    W_V = jax.random.normal(kv_, (hidden, v_dim), dtype=jnp.float32) / hidden

    out = simple_retention(X, W_Q, W_K, W_V, gamma)
    out = jax.block_until_ready(out)

    ref = _retention_reference(X, W_Q, W_K, W_V, gamma)
    # bf16 MXU operands with f32 accumulation -> slightly relaxed tolerance.
    np.testing.assert_allclose(np.asarray(out), np.asarray(ref), rtol=2e-2, atol=2e-2)

    print("KERNEL_OK")
</pallas_src>

<mosaic_0001>
module attributes {stable_mosaic.version = 11 : i64} {
  func.func @_proj_xpos_kernel(%arg0: i32, %arg1: i32, %arg2: memref<1x8x32xbf16, #tpu.memory_space<vmem>>, %arg3: memref<32x640xbf16, #tpu.memory_space<vmem>>, %arg4: memref<8x128xf32, #tpu.memory_space<vmem>>, %arg5: memref<8x128xf32, #tpu.memory_space<vmem>>, %arg6: memref<8x128xf32, #tpu.memory_space<vmem>>, %arg7: memref<8x128xf32, #tpu.memory_space<vmem>>, %arg8: memref<1x8x128xbf16, #tpu.memory_space<vmem>>, %arg9: memref<1x8x128xbf16, #tpu.memory_space<vmem>>, %arg10: memref<1x8x128xbf16, #tpu.memory_space<vmem>>) attributes {dimension_semantics = [#tpu.dimension_semantics<parallel>, #tpu.dimension_semantics<parallel>], iteration_bounds = array<i64: 2, 1>, scalar_prefetch = 0 : i64, scratch_operands = 0 : i64, tpu.core_type = #tpu.core_type<tc>, window_params = [{transform_indices = @transform_0, window_bounds = array<i64: 1, 8, 32>}, {pipeline_mode = #tpu.pipeline_mode<synchronous>, transform_indices = @transform_1, window_bounds = array<i64: 32, 640>}, {transform_indices = @transform_2, window_bounds = array<i64: 8, 128>}, {transform_indices = @transform_3, window_bounds = array<i64: 8, 128>}, {transform_indices = @transform_4, window_bounds = array<i64: 8, 128>}, {transform_indices = @transform_5, window_bounds = array<i64: 8, 128>}, {transform_indices = @transform_6, window_bounds = array<i64: 1, 8, 128>}, {transform_indices = @transform_7, window_bounds = array<i64: 1, 8, 128>}, {transform_indices = @transform_8, window_bounds = array<i64: 1, 8, 128>}]} {
    %c0 = arith.constant 0 : index
    %c0_0 = arith.constant 0 : index
    %c0_1 = arith.constant 0 : index
    %0 = vector.load %arg2[%c0, %c0_0, %c0_1] : memref<1x8x32xbf16, #tpu.memory_space<vmem>>, vector<1x8x32xbf16>
    %1 = vector.shape_cast %0 : vector<1x8x32xbf16> to vector<8x32xbf16>
    %c0_2 = arith.constant 0 : index
    %c0_3 = arith.constant 0 : index
    %2 = vector.load %arg3[%c0_2, %c0_3] : memref<32x640xbf16, #tpu.memory_space<vmem>>, vector<32x640xbf16>
    %cst = arith.constant dense<0.000000e+00> : vector<8x640xf32>
    %3 = tpu.matmul %1, %2, %cst {dimension_numbers = #tpu.dot_dimension_numbers<[1], [0], [0], [1], [0, 0, 1, 1], [], []>} : vector<8x32xbf16>, vector<32x640xbf16>, vector<8x640xf32> -> vector<8x640xf32>
    %4 = vector.extract_strided_slice %3 {offsets = [0, 0], sizes = [8, 128], strides = [1, 1]} : vector<8x640xf32> to vector<8x128xf32>
    %5 = vector.extract_strided_slice %3 {offsets = [0, 128], sizes = [8, 128], strides = [1, 1]} : vector<8x640xf32> to vector<8x128xf32>
    %6 = vector.extract_strided_slice %3 {offsets = [0, 256], sizes = [8, 128], strides = [1, 1]} : vector<8x640xf32> to vector<8x128xf32>
    %7 = vector.extract_strided_slice %3 {offsets = [0, 384], sizes = [8, 128], strides = [1, 1]} : vector<8x640xf32> to vector<8x128xf32>
    %8 = vector.extract_strided_slice %3 {offsets = [0, 512], sizes = [8, 128], strides = [1, 1]} : vector<8x640xf32> to vector<8x128xf32>
    %c0_4 = arith.constant 0 : index
    %c0_5 = arith.constant 0 : index
    %9 = vector.load %arg4[%c0_4, %c0_5] : memref<8x128xf32, #tpu.memory_space<vmem>>, vector<8x128xf32>
    %10 = arith.mulf %4, %9 : vector<8x128xf32>
    %c0_6 = arith.constant 0 : index
    %c0_7 = arith.constant 0 : index
    %11 = vector.load %arg5[%c0_6, %c0_7] : memref<8x128xf32, #tpu.memory_space<vmem>>, vector<8x128xf32>
    %12 = arith.mulf %5, %11 : vector<8x128xf32>
    %13 = arith.addf %10, %12 : vector<8x128xf32>
    %14 = arith.truncf %13 : vector<8x128xf32> to vector<8x128xbf16>
    %c0_8 = arith.constant 0 : index
    %c0_9 = arith.constant 0 : index
    %c0_10 = arith.constant 0 : index
    %15 = vector.load %arg8[%c0_8, %c0_9, %c0_10] : memref<1x8x128xbf16, #tpu.memory_space<vmem>>, vector<1x8x128xbf16>
    %16 = vector.shape_cast %15 : vector<1x8x128xbf16> to vector<8x128xbf16>
    %17 = vector.shape_cast %14 : vector<8x128xbf16> to vector<1x8x128xbf16>
    tpu.vector_store %arg8[%c0_8, %c0_9, %c0_10], %17 {strides = array<i32>} : memref<1x8x128xbf16, #tpu.memory_space<vmem>>, vector<1x8x128xbf16>,
    %c0_11 = arith.constant 0 : index
    %c0_12 = arith.constant 0 : index
    %18 = vector.load %arg6[%c0_11, %c0_12] : memref<8x128xf32, #tpu.memory_space<vmem>>, vector<8x128xf32>
    %19 = arith.mulf %6, %18 : vector<8x128xf32>
    %c0_13 = arith.constant 0 : index
    %c0_14 = arith.constant 0 : index
    %20 = vector.load %arg7[%c0_13, %c0_14] : memref<8x128xf32, #tpu.memory_space<vmem>>, vector<8x128xf32>
    %21 = arith.mulf %7, %20 : vector<8x128xf32>
    %22 = arith.addf %19, %21 : vector<8x128xf32>
    %23 = arith.truncf %22 : vector<8x128xf32> to vector<8x128xbf16>
    %c0_15 = arith.constant 0 : index
    %c0_16 = arith.constant 0 : index
    %c0_17 = arith.constant 0 : index
    %24 = vector.load %arg9[%c0_15, %c0_16, %c0_17] : memref<1x8x128xbf16, #tpu.memory_space<vmem>>, vector<1x8x128xbf16>
    %25 = vector.shape_cast %24 : vector<1x8x128xbf16> to vector<8x128xbf16>
    %26 = vector.shape_cast %23 : vector<8x128xbf16> to vector<1x8x128xbf16>
    tpu.vector_store %arg9[%c0_15, %c0_16, %c0_17], %26 {strides = array<i32>} : memref<1x8x128xbf16, #tpu.memory_space<vmem>>, vector<1x8x128xbf16>,
    %27 = arith.truncf %8 : vector<8x128xf32> to vector<8x128xbf16>
    %c0_18 = arith.constant 0 : index
    %c0_19 = arith.constant 0 : index
    %c0_20 = arith.constant 0 : index
    %28 = vector.load %arg10[%c0_18, %c0_19, %c0_20] : memref<1x8x128xbf16, #tpu.memory_space<vmem>>, vector<1x8x128xbf16>
    %29 = vector.shape_cast %28 : vector<1x8x128xbf16> to vector<8x128xbf16>
    %30 = vector.shape_cast %27 : vector<8x128xbf16> to vector<1x8x128xbf16>
    tpu.vector_store %arg10[%c0_18, %c0_19, %c0_20], %30 {strides = array<i32>} : memref<1x8x128xbf16, #tpu.memory_space<vmem>>, vector<1x8x128xbf16>,
    return
  }
  func.func @transform_0(%arg0: i32, %arg1: i32) -> (i32, i32, i32) {
    %c0_i32 = arith.constant 0 : i32
    %c0_i32_0 = arith.constant 0 : i32
    return %arg0, %arg1, %c0_i32 : i32, i32, i32
  }
  func.func @transform_1(%arg0: i32, %arg1: i32) -> (i32, i32) {
    %c0_i32 = arith.constant 0 : i32
    %c0_i32_0 = arith.constant 0 : i32
    %c0_i32_1 = arith.constant 0 : i32
    return %c0_i32, %c0_i32_0 : i32, i32
  }
  func.func @transform_2(%arg0: i32, %arg1: i32) -> (i32, i32) {
    %c0_i32 = arith.constant 0 : i32
    %c0_i32_0 = arith.constant 0 : i32
    return %arg1, %c0_i32 : i32, i32
  }
  func.func @transform_3(%arg0: i32, %arg1: i32) -> (i32, i32) {
    %c0_i32 = arith.constant 0 : i32
    %c0_i32_0 = arith.constant 0 : i32
    return %arg1, %c0_i32 : i32, i32
  }
  func.func @transform_4(%arg0: i32, %arg1: i32) -> (i32, i32) {
    %c0_i32 = arith.constant 0 : i32
    %c0_i32_0 = arith.constant 0 : i32
    return %arg1, %c0_i32 : i32, i32
  }
  func.func @transform_5(%arg0: i32, %arg1: i32) -> (i32, i32) {
    %c0_i32 = arith.constant 0 : i32
    %c0_i32_0 = arith.constant 0 : i32
    return %arg1, %c0_i32 : i32, i32
  }
  func.func @transform_6(%arg0: i32, %arg1: i32) -> (i32, i32, i32) {
    %c0_i32 = arith.constant 0 : i32
    %c0_i32_0 = arith.constant 0 : i32
    return %arg0, %arg1, %c0_i32 : i32, i32, i32
  }
  func.func @transform_7(%arg0: i32, %arg1: i32) -> (i32, i32, i32) {
    %c0_i32 = arith.constant 0 : i32
    %c0_i32_0 = arith.constant 0 : i32
    return %arg0, %arg1, %c0_i32 : i32, i32, i32
  }
  func.func @transform_8(%arg0: i32, %arg1: i32) -> (i32, i32, i32) {
    %c0_i32 = arith.constant 0 : i32
    %c0_i32_0 = arith.constant 0 : i32
    return %arg0, %arg1, %c0_i32 : i32, i32, i32
  }
}

</mosaic_0001>

<bundles_post_ra>
// kernel: tpu_custom_call.1
= control target key start
LH: loop header
LB: loop body
LE: loop exit
PB: predicated region body
PF: predicated region fallthrough
CT: control target
= control target key end

     0   :  { %s1713_s0 = inlined_call_operand.hbm [shape: bf16[2,8,32], index: 0, kind: input, shape index: {}]   ;;  %s1714_s1 = inlined_call_operand.hbm [shape: bf16[32,640], index: 1, kind: input, shape index: {}]   ;;  %s1715_s2 = inlined_call_operand.hbm [shape: f32[8,128], index: 2, kind: input, shape index: {}]   ;;  %s1716_s3 = inlined_call_operand.hbm [shape: f32[8,128], index: 3, kind: input, shape index: {}]   ;;  %s1717_s4 = inlined_call_operand.hbm [shape: f32[8,128], index: 4, kind: input, shape index: {}]   ;;  %s1718_s5 = inlined_call_operand.hbm [shape: f32[8,128], index: 5, kind: input, shape index: {}]   ;;  %s1719_s6 = inlined_call_operand.hbm [shape: bf16[2,8,128], index: 6, kind: output, shape index: {0}]   ;;  %s1720_s7 = inlined_call_operand.hbm [shape: bf16[2,8,128], index: 7, kind: output, shape index: {1}]   ;;  %s1721_s8 = inlined_call_operand.hbm [shape: bf16[2,8,128], index: 8, kind: output, shape index: {2}]  }
   0x1   :  { %1723 = sst [smem:[#allocation23_spill]] %s1713_s0 }
   0x2   :  { %1724 = sst [smem:[#allocation24_spill]] %s1714_s1 }
   0x3   :  { %1725 = sst [smem:[#allocation25_spill]] %s1715_s2 }
   0x4   :  { %1726 = sst [smem:[#allocation26_spill]] %s1716_s3 }
   0x5   :  { %14 = vsyncpa [#allocation3], 0 }
   0x6   :  { %16 = vsyncpa [#allocation3 + $0x1], 0 }
   0x7   :  { %17 = vsyncpa [#allocation6], 0 }
   0x8   :  { %18 = vsyncpa [#allocation9], 0 }
   0x9   :  { %19 = vsyncpa [#allocation12], 0 }
   0xa   :  { %20 = vsyncpa [#allocation4], 0 }
   0xb   :  { %22 = vsyncpa [#allocation4 + $0x1], 0 }
   0xc   :  { %23 = vsyncpa [#allocation15], 0 }
   0xd   :  { %25 = vsyncpa [#allocation15 + $0x1], 0  ;;  %s1471_s27 = smov 0   ;;  %s1473_s28 = smov 0  }
   0xe   :  { %s1475_s29 = smov 0   ;;  %s1477_s30 = smov 0  }
   0xf   :  { %s1479_s9 = smov 0   ;;  %s1481_s10 = smov 0  }
  0x10 LB: > { %s1502_s11 = sadd.s32 4294967295, %s1417_s10   ;;  %p876_p0 = scmp.ge.s32.totalorder %s1417_s10, 1  ;;  %s1417_s10 = sphi %s1481_s10, %s31_s10   ;;  %s1413_s9 = sphi %s1479_s9, %s1742_s9   ;;  %s1409_s30 = sphi %s1477_s30, %s1741_s30   ;;  %s1405_s29 = sphi %s1475_s29, %s1740_s29   ;;  %s1401_s28 = sphi %s1473_s28, %s1739_s28   ;;  %s1397_s27 = sphi %s1471_s27, %s1738_s27  }
  0x11   : > { %p66_p1 = scmp.eq.s32.totalorder %s1502_s11, 0  ;;  %p285_p2 = scmp.lt.s32.totalorder %s1417_s10, 3 }
  0x12   : > { %s1727_s1 = sld [smem:[#allocation24_spill]]  ;;  %s1419_s16 = smov [#allocation5]  }
  0x13   : > { %p1510_p3 = pnand %p876_p0, %p285_p2  ;;  %s298_s17 = sshll.u32 %s1419_s16, 4  ;;  %s299_s17 = int_to_ptr.vmem [resolvable:$true] %s298_s17 }
  0x14   : > { %p882_p6 = scmp.ge.s32.totalorder %s1417_s10, 2  ;;  %s1730_s3 = sld [smem:[#allocation26_spill]] }
  0x15   : > { %p986_p4 = pneg %p1510_p3  ;;  %s1420_s22 = smov 320  }
  0x16   : > { %s1421_s23 = smov 20   ;;  %s1422_s24 = smov [#allocation8]  }
  0x17   : > { %p1518_p5 = pnand %p986_p4, %p66_p1  ;;  %s329_s25 = sshll.u32 %s1422_s24, 4  ;;  %s330_s25 = int_to_ptr.vmem [resolvable:$true] %s329_s25 }
  0x18   : > { %s296_s14 = sshll.u32 %s1727_s1, 4  ;;  %s1731_s2 = sld [smem:[#allocation25_spill]]  ;;  %s297_s14 = int_to_ptr.hbm [resolvable:$true] %s296_s14 }
  0x19   : > { %989 = dma.hbm_to_vmem [thread:$0]  (!%p1518_p5), %s297_s14, 1280, %s299_s17, [#allocation6], %s1420_s22, %s1420_s22, %s1421_s23  }
  0x1a   : > { %s327_s21 = sshll.u32 %s1730_s3, 4  ;;  %s341_s20 = sshll.u32 %s1717_s4, 4  ;;  %s328_s21 = int_to_ptr.hbm [resolvable:$true] %s327_s21  ;;  %s342_s20 = int_to_ptr.hbm [resolvable:$true] %s341_s20 }
  0x1b   : > { %995 = dma.hbm_to_vmem [thread:$0]  (!%p1518_p5), %s328_s21, 128, %s330_s25, [#allocation9]  }
  0x1c   : > { %s1423_s1 = smov [#allocation7]   ;;  %s1424_s17 = smov [#allocation10]  }
  0x1d   : > { %s315_s14 = sshll.u32 %s1423_s1, 4  ;;  %s343_s21 = sshll.u32 %s1424_s17, 4  ;;  %s316_s14 = int_to_ptr.vmem [resolvable:$true] %s315_s14  ;;  %s344_s21 = int_to_ptr.vmem [resolvable:$true] %s343_s21 }
  0x1e   : > { %s313_s13 = sshll.u32 %s1731_s2, 4  ;;  %s355_s24 = sshll.u32 %s1718_s5, 4  ;;  %s314_s13 = int_to_ptr.hbm [resolvable:$true] %s313_s13  ;;  %s356_s24 = int_to_ptr.hbm [resolvable:$true] %s355_s24 }
  0x1f   : > { %992 = dma.hbm_to_vmem [thread:$0]  (!%p1518_p5), %s314_s13, 128, %s316_s14, [#allocation6]  }
  0x20   : > { %998 = dma.hbm_to_vmem [thread:$0]  (!%p1518_p5), %s342_s20, 128, %s344_s21, [#allocation9]  }
  0x21   : > { %s1425_s1 = smov [#allocation11]   ;;  %s1722_s26 = sadd.s32 4294967294, %s1417_s10  }
  0x22   : > { %s357_s25 = sshll.u32 %s1425_s1, 4  ;;  %s43_s12 = sadd.s32 1, %s1413_s9  ;;  %s358_s25 = int_to_ptr.vmem [resolvable:$true] %s357_s25 }
  0x23   : > { %1001 = dma.hbm_to_vmem [thread:$0]  (!%p1518_p5), %s356_s24, 128, %s358_s25, [#allocation12]  }
  0x24   : > { %s52_s13 = sadd.s32 1, %s1405_s29  ;;  %p45_p7 = scmp.ge.s32.totalorder %s43_s12, 2 }
  0x25   : > { %p59_p8 = scmp.ne.s32.totalorder %s1405_s29, %s1401_s28  ;;  %p60_p9 = scmp.eq.s32.totalorder %s1417_s10, 0 }
  0x26   : > { %p65_p10 = scmp.ne.s32.totalorder %s1401_s28, %s1397_s27  ;;  %s1744_s12 = smov (%p45_p7, %s43_s12), 0 }
  0x27   : > { %p1555_p11 = por %p60_p9, %p59_p8  ;;  %s47_s19 = ssub.s32 %s1413_s9, %s1744_s12 }
  0x28   : > { %p1561_p12 = por %p66_p1, %p65_p10  ;;  %p216_p13 = scmp.eq.s32.totalorder %s1502_s11, 1 }
  0x29   : > { %p50_p0 = scmp.eq.s32.totalorder %s47_s19, 0  ;;  %p222_p2 = scmp.eq.s32.totalorder %s1722_s26, 1 }
  0x2a   : > { %p1570_p4 = por %p216_p13, %p59_p8  ;;  %p1021_p5 = scmp.lt.s32.totalorder %s1417_s10, 2 }
  0x2b   : > { %s1576_s14 = scalar_select %p50_p0, %s1405_s29, %s52_s13  }
  0x2c   : > { %p1578_p7 = por %p222_p2, %p65_p10  ;;  %s368_s21 = sand.u32 1, %s1405_s29  }
  0x2d   : > { %s883_s22 = sshll.u32 %s368_s21, 2  ;;  %s884_s23 = sshll.u32 %s1413_s9, 2 }
  0x2e   : > { %s1736_s0 = sld [smem:[#allocation23_spill]]  ;;  %s372_s19 = scalar_lea.vmem [#allocation2], %s883_s22 }
  0x2f   : > { %s381_s26 = sshll.u32 %s372_s19, 4  ;;  %p1003_p8 = pnand %p1021_p5, %p1555_p11  ;;  %s382_s26 = int_to_ptr.vmem [resolvable:$true] %s381_s26 }
  0x30   : > { %s369_s13 = scalar_lea.sflag [#allocation3], %s368_s21  ;;  %s1592_s3 = sand.u32 (!%p1510_p3), 1, %s1401_s28  }
  0x31   : > { %s1595_s24 = sshll.u32 (!%p1510_p3), %s1592_s3, 2  ;;  %s393_s22 = scalar_lea.sflag (!%p1510_p3), [#allocation3], %s1592_s3 }
  0x32   : > { %390 = sbr.rel (%p1510_p3) target bundleno = 237 (0xed), region = 44 }
  0x34   : > { %s377_s25 = scalar_lea.hbm %s1736_s0, %s884_s23  ;;  %s396_s23 = scalar_lea.vmem (!%p1510_p3), [#allocation2], %s1595_s24 }
  0x35   : > { %s379_s2 = sshll.u32 %s377_s25, 4  ;;  %s380_s2 = int_to_ptr.hbm [resolvable:$true] %s379_s2 }
  0x36   : > { %1005 = dma.hbm_to_vmem [thread:$0]  (!%p1003_p8), %s380_s2, 64, %s382_s26, %s369_s13  }
  0x37   : > { %1372 = dma.done.wait (%p1561_p12), %s393_s22, 64  }
  0x38   : > { %1374 = vsyncadd (%p1561_p12), %s393_s22, 4294967232 }
  0x39   : > { %1376 = dma.done.wait (%p66_p1), [#allocation6], 1408  }
  0x3a   : > { %1378 = vsyncadd (%p66_p1), [#allocation6], 4294965888 }
  0x3b   : > { %1380 = dma.done.wait (%p66_p1), [#allocation9], 256  }
  0x3c   : > { %1382 = vsyncadd (%p66_p1), [#allocation9], 4294967040 }
  0x3d   : > { %1384 = dma.done.wait (%p66_p1), [#allocation12], 128  }
  0x3e   : > { %1386 = vsyncadd (%p66_p1), [#allocation12], 4294967168  ;;  %v917_v0 = vld [vmem:[#allocation5 + $0x28] sm:$0xf]  ;;  %v955_v1 = vld [vmem:[#allocation5 + $0x38] sm:$0xf0] }
  0x3f   : > { %v953_v2 = vld [vmem:[#allocation5 + $0x2c] sm:$0xf]  ;;  %v918_v3 = vor.u32 %v955_v1, %v917_v0  ;;  %v919_v4 = vld [vmem:[#allocation5 + $0x3c] sm:$0xf0]  ;;  %v925_v5 = vld [vmem:[#allocation5 + $0x30] sm:$0xf] }
  0x40   : > { %v956_v6 = vld [vmem:[#allocation5 + $0x40] sm:$0xf0]  ;;  %v922_v7 = vor.u32 %v953_v2, %v919_v4  ;;  %v954_v9 = vld [vmem:[#allocation5 + $0x34] sm:$0xf]  ;;  %v927_v10 = vld [vmem:[#allocation5 + $0x44] sm:$0xf0] }
  0x41   : > { %v926_v8 = vor.u32 %v956_v6, %v925_v5  ;;  %v897_v11 = vld [vmem:[#allocation5] sm:$0xf]  ;;  %541 = vmatpush.bf16.msra.mxu0 %v918_v3  ;;  %v930_v12 = vor.u32 %v954_v9, %v927_v10  ;;  %v950_v13 = vld [vmem:[#allocation5 + $0x10] sm:$0xf0]  ;;  %v948_v14 = vld [vmem:[#allocation5 + $0x4] sm:$0xf] }
  0x42   : > { %v899_v15 = vld [vmem:[#allocation5 + $0x14] sm:$0xf0]  ;;  %554 = vmatpush.bf16.msra.mxu1 %v922_v7  ;;  %v898_v16 = vor.u32 %v950_v13, %v897_v11  ;;  %v905_v18 = vld [vmem:[#allocation5 + $0x8] sm:$0xf]  ;;  %v951_v19 = vld [vmem:[#allocation5 + $0x18] sm:$0xf0] }
  0x43   : > { %567 = vmatpush.bf16.msra.mxu2 %v926_v8  ;;  %v902_v17 = vor.u32 %v948_v14, %v899_v15  ;;  %v949_v20 = vld [vmem:[#allocation5 + $0xc] sm:$0xf]  ;;  %580 = vmatpush.bf16.msra.mxu3 %v930_v12  ;;  %v906_v21 = vor.u32 %v951_v19, %v905_v18  ;;  %v907_v22 = vld [vmem:[#allocation5 + $0x1c] sm:$0xf0]  ;;  %v933_v23 = vld [vmem:[#allocation5 + $0x38] sm:$0xf] }
  0x44   : > { %v910_v24 = vor.u32 %v949_v20, %v907_v22  ;;  %v957_v25 = vld [vmem:[#allocation5 + $0x48] sm:$0xf0]  ;;  %v913_v26 = vld [vmem:[#allocation5 + $0x10] sm:$0xf]  ;;  %v952_v27 = vld [vmem:[#allocation5 + $0x20] sm:$0xf0] }
  0x45   : > { %542 = vmatpush.bf16.msra.mxu0 %v898_v16  ;;  %v466_v28 = vld [vmem:[%s396_s23] sm:$0xf]  ;;  %vm531_vm0 = vcmask 261120   ;;  %v934_v29 = vor.u32 %v957_v25, %v933_v23  ;;  %v914_v30 = vor.u32 %v952_v27, %v913_v26  ;;  %s1618_s2 = sshll.u32 %s1409_s30, 2  ;;  %v600_v31 = vld [vmem:[#allocation7] sm:$0xff]  ;;  %s450_s18 = scalar_lea.vmem [#allocation13], %s1595_s24 }
  0x46   : > { %555 = vmatpush.bf16.msra.mxu1 %v902_v17  ;;  %v602_v32 = vld [vmem:[#allocation8] sm:$0xff]  ;;  %s638_s16 = scalar_lea.hbm %s1719_s6, %s1618_s2  ;;  %s1625_s21 = sshll.u32 %s450_s18, 4  ;;  %v607_v38 = vld [vmem:[#allocation10] sm:$0xff]  ;;  %v609_v40 = vld [vmem:[#allocation11] sm:$0xff]  ;;  %s641_s21 = int_to_ptr.vmem [resolvable:$true] %s1625_s21 }
  0x47   : > { %568 = vmatpush.bf16.msra.mxu2 %v906_v21  ;;  %581 = vmatpush.bf16.msra.mxu3 %v910_v24  ;;  %s1627_s1 = sshll.u32 %s638_s16, 4  ;;  %s653_s19 = scalar_lea.hbm %s1720_s7, %s1618_s2  ;;  %s643_s1 = int_to_ptr.hbm [resolvable:$true] %s1627_s1 }
  0x48   : > { %935 = vmatmul.msk.bf16.vlgmr.msra.gmra.mxu0 %vm531_vm0, %v466_v28  ;;  %s621_s13 = sand.u32 1, %s1502_s11   ;;  %s617_s22 = scalar_lea.sflag [#allocation4], %s1592_s3 }
  0x49   : > { %593 = vmatpush.bf16.msrb.mxu0 %v934_v29  ;;  %936 = vmatmul.msk.bf16.vlgmr.msra.gmra.mxu1 %vm531_vm0, %v466_v28  ;;  %s1277_s23 = sshra.s32 %s643_s1, 4  ;;  %s1283_s30 = scalar_lea.hbm %s1719_s6, 8  ;;  %s1278_s23 = int_to_ptr.hbm [resolvable:$true] %s1277_s23 }
  0x4a   : > { %937 = vmatmul.msk.bf16.vlgmr.msra.gmra.mxu2 %vm531_vm0, %v466_v28  ;;  %938 = vmatmul.msk.bf16.vlgmr.msra.gmra.mxu3 %vm531_vm0, %v466_v28  ;;  %s1279_s15 = scalar_lea.hbm %s1278_s23, 4  ;;  %p1284_p10 = scmp.lt.s32.totalorder %s1278_s23, %s1719_s6 }
  0x4b   : > { %p1280_p1 = scmp.ne.s32.totalorder %s1278_s23, %s1279_s15  ;;  %p1285_p11 = scmp.lt.s32.totalorder %s1283_s30, %s1279_s15 }
  0x4d   : > { %594 = vmatpush.bf16.msrb.mxu0 %v914_v30  ;;  %p1281_p3 = pnand %p1280_p1, %p1570_p4  ;;  %p1286_p12 = por %p1285_p11, %p1284_p10 }
  0x4f   : > { %p1282_p9 = pneg %p1281_p3 }
  0x51   : > { %p1287_p13 = pnand %p1286_p12, %p1282_p9 }
  0x58   : > { %939 = vmatmul.msk.bf16.vlgmr.msrb.gmra.mxu0 %vm531_vm0, %v466_v28 }
  0xc5   : > { %v544_v33 = vpop.f32.mrf.mxu0 }
  0xc6   : > { %v601_v34 = vmul.f32 %v600_v31, %v544_v33  ;;  %v557_v35 = vpop.f32.mrf.mxu1 }
  0xc7   : > { %v603_v36 = vmul.f32 %v602_v32, %v557_v35 }
  0xc9   : > { %v604_v37 = vadd.f32 %v603_v36, %v601_v34 }
  0xcb   : > { %v605_v39 = vpack.c.bf16 %v604_v37, %v604_v37 }
  0xcd   : > { %v570_v41 = vpop.f32.mrf.mxu2  ;;  %v583_v43 = vpop.f32.mrf.mxu3  ;;  %606 = vst [vmem:[%s450_s18] sm:$0xf] %v605_v39 }
  0xce   : > { %v608_v42 = vmul.f32 %v607_v38, %v570_v41  ;;  %v546_v44 = vpop.f32.mrf.mxu0  ;;  %v610_v45 = vmul.f32 %v609_v40, %v583_v43  ;;  %v559_v46 = vpop.f32.mrf.mxu1 }
  0xcf   : > { %1290 = shalt.err (!%p1287_p13)
}
  0xd0   : > { %980 = dma.vmem_to_hbm [thread:$0]  (%p1570_p4), %s641_s21, 64, %s643_s1, %s617_s22   ;;  %v611_v47 = vadd.f32 %v610_v45, %v608_v42 }
  0xd1   : > { %s457_s3 = scalar_lea.vmem [#allocation14], %s1595_s24  ;;  %s657_s26 = sshll.u32 %s653_s19, 4  ;;  %s658_s26 = int_to_ptr.hbm [resolvable:$true] %s657_s26 }
  0xd2   : > { %s1648_s18 = sshll.u32 %s457_s3, 4  ;;  %s668_s23 = scalar_lea.hbm %s1721_s8, %s1618_s2  ;;  %v612_v48 = vpack.c.bf16 %v611_v47, %v611_v47  ;;  %s656_s18 = int_to_ptr.vmem [resolvable:$true] %s1648_s18 }
  0xd3   : > { %s464_s15 = scalar_lea.vmem [#allocation16], %s1595_s24  ;;  %s1658_s25 = sshll.u32 %s668_s23, 4  ;;  %s673_s25 = int_to_ptr.hbm [resolvable:$true] %s1658_s25 }
  0xd4   : > { %s1656_s30 = sshll.u32 %s464_s15, 4  ;;  %613 = vst [vmem:[%s457_s3] sm:$0xf] %v612_v48  ;;  %s1662_s21 = scalar_lea.sflag [#allocation15], %s621_s13  ;;  %s671_s30 = int_to_ptr.vmem [resolvable:$true] %s1656_s30 }
  0xd5   : > { %v572_v49 = vpop.f32.mrf.mxu2  ;;  %v585_v50 = vpop.f32.mrf.mxu3  ;;  %s1305_s1 = sshra.s32 %s658_s26, 4  ;;  %s1311_s22 = scalar_lea.hbm %s1720_s7, 8  ;;  %s1306_s1 = int_to_ptr.hbm [resolvable:$true] %s1305_s1 }
  0xd6   : > { %v596_v51 = vpop.f32.mrf.mxu0  ;;  %s1307_s19 = scalar_lea.hbm %s1306_s1, 4  ;;  %p1312_p8 = scmp.lt.s32.totalorder %s1306_s1, %s1720_s7 }
  0xd7   : > { %p1308_p0 = scmp.ne.s32.totalorder %s1306_s1, %s1307_s19  ;;  %p1313_p1 = scmp.lt.s32.totalorder %s1311_s22, %s1307_s19 }
  0xd9   : > { %p1309_p2 = pnand %p1308_p0, %p1570_p4  ;;  %p1314_p3 = por %p1313_p1, %p1312_p8 }
  0xdb   : > { %p1310_p5 = pneg %p1309_p2 }
  0xdd   : > { %p1315_p9 = pnand %p1314_p3, %p1310_p5 }
  0xdf   : > { %1318 = shalt.err (!%p1315_p9)
}
  0xe0   : > { %981 = dma.vmem_to_hbm [thread:$0]  (%p1570_p4), %s656_s18, 64, %s658_s26, %s1662_s21   ;;  %v614_v52 = vpack.c.bf16 %v596_v51, %v596_v51 }
  0xe1   : > { %s1333_s11 = sshra.s32 %s673_s25, 4  ;;  %s1339_s1 = scalar_lea.hbm %s1721_s8, 8  ;;  %s1334_s11 = int_to_ptr.hbm [resolvable:$true] %s1333_s11 }
  0xe2   : > { %615 = vst [vmem:[%s464_s15] sm:$0xf] %v614_v52  ;;  %s1335_s13 = scalar_lea.hbm %s1334_s11, 4  ;;  %p1340_p13 = scmp.lt.s32.totalorder %s1334_s11, %s1721_s8 }
  0xe3   : > { %p1336_p10 = scmp.ne.s32.totalorder %s1334_s11, %s1335_s13  ;;  %p1341_p0 = scmp.lt.s32.totalorder %s1339_s1, %s1335_s13 }
  0xe5   : > { %p1337_p11 = pnand %p1336_p10, %p1570_p4  ;;  %p1342_p2 = por %p1341_p0, %p1340_p13 }
  0xe7   : > { %p1338_p12 = pneg %p1337_p11 }
  0xe9   : > { %p1343_p5 = pnand %p1342_p2, %p1338_p12 }
  0xeb   : > { %1346 = shalt.err (!%p1343_p5)
}
  0xec   : > { %982 = dma.vmem_to_hbm [thread:$0]  (%p1570_p4), %s671_s30, 64, %s673_s25, %s1662_s21   ;;  %v598_v53 = vpop.f32.mrf.mxu0 }
  0xed PF: > { %s684_s18 = sand.u32 1, %s1397_s27   ;;  %p1007_p8 = pnand %p882_p6, %p1578_p7 }
  0xee   : > { %s685_s26 = scalar_lea.sflag [#allocation4], %s684_s18 }
  0xef   : > { %p1008_p1 = pneg %p1007_p8 }
  0xf1   : > { %1388 = dma.done.wait (%p1008_p1), %s685_s26, 64  }
  0xf2   : > { %1390 = vsyncadd (%p1008_p1), %s685_s26, 4294967232  ;;  %s1737_s15 = sadd.s32 4294967294, %s1417_s10  }
  0xf3   : > { %s694_s24 = sand.u32 1, %s1737_s15  }
  0xf4   : > { %s695_s22 = scalar_lea.sflag [#allocation15], %s694_s24 }
  0xf5   : > { %1392 = dma.done.wait (%p1008_p1), %s695_s22, 128  }
  0xf6   : > { %1394 = vsyncadd (%p1008_p1), %s695_s22, 4294967168  ;;  %s31_s10 = sadd.s32 1, %s1417_s10   ;;  %s1738_s27 = smov %s1401_s28 }
  0xf7   : > { %p28_p4 = scmp.ge.s32.totalorder %s31_s10, 4   ;;  %s1739_s28 = smov %s1405_s29 }
  0xf8   : > { %s1740_s29 = smov %s1576_s14  ;;  %s1741_s30 = smov %s1413_s9 }
  0xf9   : > { %s1742_s9 = smov %s1744_s12  ;;  %30 = sbr.rel (!%p28_p4) target bundleno = 16 (0x10), region = 145 }
  0xfe   :  { %711 = vsyncpa [#allocation3], 1 }
  0xff   :  { %713 = vsyncpa [#allocation3 + $0x1], 1 }
 0x100   :  { %714 = vsyncpa [#allocation6], 1 }
 0x101   :  { %715 = vsyncpa [#allocation9], 1 }
 0x102   :  { %716 = vsyncpa [#allocation12], 1 }
 0x103   :  { %717 = vsyncpa [#allocation4], 1 }
 0x104   :  { %719 = vsyncpa [#allocation4 + $0x1], 1 }
 0x105   :  { %720 = vsyncpa [#allocation15], 1 }
 0x106   :  { %722 = vsyncpa [#allocation15 + $0x1], 1 }

</bundles_post_ra>
